<compile_context>
chip_gen: v7x
topology: tpu7x:2x2x1
jax: 0.10.0
libtpu: 0.0.40
codegen_flags: <defaults>
</compile_context>

<pallas_src>
import functools

import jax
import jax.numpy as jnp
from jax import lax
from jax.experimental import pallas as pl
from jax.experimental.pallas import tpu as pltpu

H = 75        # hidden width of the PyTorch module
HPAD = 128    # lane/MXU-aligned hidden width (zero-padded; exact through relu/fc4)


def _round_up(n, m):
    return ((n + m - 1) // m) * m


def _pick_sub(tb):
    """Largest sub-tile width (lanes) in {1024,512,256,128} dividing tb."""
    for s in (1024, 512, 256, 128):
        if tb % s == 0:
            return s
    return tb  # unreachable: tb is always a multiple of 128


def _make_kernel(in_dim, sub, n_sub):
    """Build the fused MLP kernel for a fixed (in_dim, sub-tile, #sub-tiles)."""

    def mlp_kernel(xt_ref, pf_ref, w2_ref, w3_ref, b4_ref, o_ref):
        # xt_ref: (in_dim, TB) bf16   batch tile of x^T (batch on lanes)
        # pf_ref: (HPAD, in_dim+4) f32 packed [w1 cols | b1 | b2 | b3 | w4 col]
        # w2_ref, w3_ref: (HPAD, HPAD) bf16  (PyTorch (out, in) orientation)
        # b4_ref: (1, 1) f32 in SMEM
        # o_ref:  (1, TB) f32   lane-dense output row

        def body(s, carry):
            off = pl.multiple_of(s * sub, sub)
            xb = xt_ref[:, pl.ds(off, sub)].astype(jnp.float32)   # (in_dim, sub)

            # fc1 + relu on the VPU: in_dim broadcast-FMAs (keeps the K=4 pass off
            # the MXU), f32 w1 columns x bf16-quantized x.
            h = pf_ref[:, in_dim:in_dim + 1] + pf_ref[:, 0:1] * xb[0:1, :]
            for k in range(1, in_dim):
                h = h + pf_ref[:, k:k + 1] * xb[k:k + 1, :]
            h = jnp.maximum(h, 0.0).astype(jnp.bfloat16)          # (HPAD, sub) bf16

            # fc2 + relu (MXU, f32 acc); only the bf16 activation is materialized.
            h = jnp.maximum(
                jnp.dot(w2_ref[...], h, preferred_element_type=jnp.float32)
                + pf_ref[:, in_dim + 1:in_dim + 2], 0.0).astype(jnp.bfloat16)

            # fc3 + relu (MXU, f32 acc); stays f32 -> feeds the VPU fc4 reduce.
            h = jnp.maximum(
                jnp.dot(w3_ref[...], h, preferred_element_type=jnp.float32)
                + pf_ref[:, in_dim + 2:in_dim + 3], 0.0)

            # fc4 + sigmoid: N=1 matmul would waste the MXU; VPU mul + XLU sublane
            # reduce instead.  Zero-padded rows contribute nothing.
            logit = jnp.sum(h * pf_ref[:, in_dim + 3:in_dim + 4],
                            axis=0, keepdims=True) + b4_ref[0, 0]  # (1, sub)
            o_ref[:, pl.ds(off, sub)] = jax.nn.sigmoid(logit)
            return carry

        lax.fori_loop(0, n_sub, body, 0, unroll=True)

    return mlp_kernel


@functools.partial(jax.jit, static_argnames=("block_b",))
def ours_neural_4d_forward(x, prepared, *, block_b=8192):
    """x: (B, input_dim) f32 -> (B, 1) f32. `prepared` from prepare_params()."""
    B, in_dim = x.shape
    pf, w2p, w3p, b4p = prepared

    B_pad = _round_up(B, 128)                       # lane alignment only (not TB)
    TB = min(_round_up(block_b, 128), B_pad)        # robust, 128-aligned batch tile
    # Keep >= 2 grid steps when possible so v7x's two TensorCores both get work.
    if TB == B_pad and B_pad >= 256:
        TB = _round_up(B_pad // 2, 128)
    grid = (pl.cdiv(B_pad, TB),)                    # final block may be partial
    SUB = _pick_sub(TB)
    n_sub = TB // SUB

    # x -> (in_dim, B_pad) bf16: batch on lanes => lane-dense output block.  Under
    # jit the transpose + cast + pad fuse into a single copy pass.
    # TODO(synk): if the producer can emit x already as (in_dim, B) bf16, pass it
    # straight through and drop this copy entirely.
    xt = x.T.astype(jnp.bfloat16)
    if B_pad != B:
        xt = jnp.pad(xt, ((0, 0), (0, B_pad - B)))

    param_bytes = sum(int(p.size) * p.dtype.itemsize for p in prepared)
    cost = pl.CostEstimate(
        flops=2 * B * (in_dim * H + 2 * H * H + H),
        transcendentals=B,
        bytes_accessed=int(x.size) * x.dtype.itemsize + B * 4 + param_bytes,
    )

    kernel = _make_kernel(in_dim, SUB, n_sub)
    out_t = pl.pallas_call(
        kernel,
        out_shape=jax.ShapeDtypeStruct((1, B_pad), jnp.float32),
        grid=grid,
        in_specs=[
            pl.BlockSpec((in_dim, TB), lambda i: (0, i)),        # streamed x^T tile
            pl.BlockSpec(pf.shape, lambda i: (0, 0)),            # resident packed f32 params
            pl.BlockSpec(w2p.shape, lambda i: (0, 0)),           # resident fc2 weight (bf16)
            pl.BlockSpec(w3p.shape, lambda i: (0, 0)),           # resident fc3 weight (bf16)
            pl.BlockSpec(memory_space=pltpu.MemorySpace.SMEM),   # b4 scalar
        ],
        out_specs=pl.BlockSpec((1, TB), lambda i: (0, i)),       # lane-dense output
        compiler_params=pltpu.CompilerParams(
            dimension_semantics=("parallel",),      # megacore-shard batch on v7x
            vmem_limit_bytes=48 * 1024 * 1024,      # actual use ~4 MiB; safe on v5e-v7x
        ),
        cost_estimate=cost,
    )(xt, pf, w2p, w3p, b4p)

    return out_t[0, :B].reshape(B, 1)


def init_torch_style_params(key, input_dim):
    """Deterministic parameters with PyTorch nn.Linear shapes: W (out, in), b (out,)."""
    ks = jax.random.split(key, 8)
    s = 0.1
    w1 = jax.random.normal(ks[0], (H, input_dim), jnp.float32) * s
    b1 = jax.random.normal(ks[1], (H,), jnp.float32) * s
    w2 = jax.random.normal(ks[2], (H, H), jnp.float32) * s
    b2 = jax.random.normal(ks[3], (H,), jnp.float32) * s
    w3 = jax.random.normal(ks[4], (H, H), jnp.float32) * s
    b3 = jax.random.normal(ks[5], (H,), jnp.float32) * s
    w4 = jax.random.normal(ks[6], (1, H), jnp.float32) * s
    b4 = jax.random.normal(ks[7], (1,), jnp.float32) * s
    return (w1, b1, w2, b2, w3, b3, w4, b4)


def prepare_params(params):
    """Pad hidden dim 75 -> 128 with zeros; pack small params; cast MXU weights to bf16.

    Zero padding is exact: relu(0)=0 keeps pad rows zero through every layer and the
    zero entries of w4 contribute nothing to the final reduction.
    Packed layout: pf[:, :in_dim]=w1, pf[:, in_dim..]= [b1 | b2 | b3 | w4 column].
    """
    w1, b1, w2, b2, w3, b3, w4, b4 = params
    ph = HPAD - H
    w1p = jnp.pad(w1, ((0, ph), (0, 0))).astype(jnp.float32)        # (HPAD, in_dim), f32 (VPU fc1)
    b1p = jnp.pad(b1, (0, ph)).reshape(HPAD, 1)
    b2p = jnp.pad(b2, (0, ph)).reshape(HPAD, 1)
    b3p = jnp.pad(b3, (0, ph)).reshape(HPAD, 1)
    w4p = jnp.pad(w4, ((0, 0), (0, ph))).T                          # (HPAD, 1)
    pf = jnp.concatenate([w1p, b1p, b2p, b3p, w4p], axis=1).astype(jnp.float32)
    w2p = jnp.pad(w2, ((0, ph), (0, ph))).astype(jnp.bfloat16)      # (HPAD, HPAD)
    w3p = jnp.pad(w3, ((0, ph), (0, ph))).astype(jnp.bfloat16)
    b4p = b4.reshape(1, 1).astype(jnp.float32)                      # SMEM scalar
    return (pf, w2p, w3p, b4p)


def reference_forward(x, params):
    """Exact f32 reference mirroring the PyTorch module."""
    w1, b1, w2, b2, w3, b3, w4, b4 = params
    h = jnp.maximum(x @ w1.T + b1, 0.0)
    h = jnp.maximum(h @ w2.T + b2, 0.0)
    h = jnp.maximum(h @ w3.T + b3, 0.0)
    return jax.nn.sigmoid(h @ w4.T + b4)


def reference_forward_mixed(x, params):
    """Mirrors the kernel's precision: bf16 x / f32 w1 for fc1 (VPU), bf16 MXU for
    fc2/fc3 with f32 accumulation, f32 fc4."""
    w1, b1, w2, b2, w3, b3, w4, b4 = params
    bf, f32 = jnp.bfloat16, jnp.float32
    x16 = x.astype(bf).astype(f32)
    h = jnp.maximum(x16 @ w1.T + b1, 0.0)
    h = jnp.maximum(
        jnp.dot(h.astype(bf), w2.T.astype(bf), preferred_element_type=f32) + b2, 0.0)
    h = jnp.maximum(
        jnp.dot(h.astype(bf), w3.T.astype(bf), preferred_element_type=f32) + b3, 0.0)
    return jax.nn.sigmoid(h @ w4.T + b4)


if __name__ == "__main__":
    key = jax.random.PRNGKey(0)
    kx, kp = jax.random.split(key)

    input_dim = 4      # "4D" plane input features
    batch = 8
    x = jax.random.normal(kx, (batch, input_dim), jnp.float32)

    params = init_torch_style_params(kp, input_dim)
    prepared = prepare_params(params)

    out = jax.block_until_ready(ours_neural_4d_forward(x, prepared))
    assert out.shape == (batch, 1), out.shape

    ref_mixed = reference_forward_mixed(x, params)
    ref_exact = reference_forward(x, params)
    assert jnp.allclose(out, ref_mixed, atol=1e-3, rtol=1e-3), (out, ref_mixed)
    assert jnp.allclose(out, ref_exact, atol=2e-2, rtol=2e-2), (out, ref_exact)

    # Ragged batch spanning multiple grid tiles including a partial final block.
    x2 = jax.random.normal(kx, (300, input_dim), jnp.float32)
    out2 = jax.block_until_ready(ours_neural_4d_forward(x2, prepared, block_b=256))
    ref2 = reference_forward_mixed(x2, params)
    assert out2.shape == (300, 1), out2.shape
    assert jnp.allclose(out2, ref2, atol=1e-3, rtol=1e-3), (out2, ref2)

    # Batch large enough to exercise the in-kernel sub-tile loop and a >=2-step grid.
    x3 = jax.random.normal(kx, (2500, input_dim), jnp.float32)
    out3 = jax.block_until_ready(ours_neural_4d_forward(x3, prepared))
    ref3 = reference_forward_mixed(x3, params)
    assert out3.shape == (2500, 1), out3.shape
    assert jnp.allclose(out3, ref3, atol=1e-3, rtol=1e-3), (out3, ref3)

    print("KERNEL_OK")
</pallas_src>

<mosaic_0001>
module attributes {stable_mosaic.version = 11 : i64} {
  func.func @mlp_kernel(%arg0: i32, %arg1: memref<4x128xbf16, #tpu.memory_space<vmem>>, %arg2: memref<128x8xf32, #tpu.memory_space<vmem>>, %arg3: memref<128x128xbf16, #tpu.memory_space<vmem>>, %arg4: memref<128x128xbf16, #tpu.memory_space<vmem>>, %arg5: memref<1x1xf32, #tpu.memory_space<smem>>, %arg6: memref<1x128xf32, #tpu.memory_space<vmem>>) attributes {dimension_semantics = [#tpu.dimension_semantics<parallel>], iteration_bounds = array<i64: 1>, scalar_prefetch = 0 : i64, scratch_operands = 0 : i64, tpu.core_type = #tpu.core_type<tc>, window_params = [{transform_indices = @transform_0, window_bounds = array<i64: 4, 128>}, {pipeline_mode = #tpu.pipeline_mode<synchronous>, transform_indices = @transform_1, window_bounds = array<i64: 128, 8>}, {pipeline_mode = #tpu.pipeline_mode<synchronous>, transform_indices = @transform_2, window_bounds = array<i64: 128, 128>}, {pipeline_mode = #tpu.pipeline_mode<synchronous>, transform_indices = @transform_3, window_bounds = array<i64: 128, 128>}, {transform_indices = @transform_4, window_bounds = array<i64: 1, 1>}, {transform_indices = @transform_5, window_bounds = array<i64: 1, 128>}]} {
    %c0_i32 = arith.constant 0 : i32
    %c128_i32 = arith.constant 128 : i32
    %0 = arith.muli %c0_i32, %c128_i32 : i32
    %1 = tpu.assume_multiple %0, 128 : i32
    %c0 = arith.constant 0 : index
    %2 = arith.index_cast %1 : i32 to index
    %3 = vector.load %arg1[%c0, %2] : memref<4x128xbf16, #tpu.memory_space<vmem>>, vector<4x128xbf16>
    %4 = arith.extf %3 : vector<4x128xbf16> to vector<4x128xf32>
    %c0_0 = arith.constant 0 : index
    %c4 = arith.constant 4 : index
    %5 = vector.load %arg2[%c0_0, %c4] : memref<128x8xf32, #tpu.memory_space<vmem>>, vector<128x1xf32>
    %c0_1 = arith.constant 0 : index
    %c0_2 = arith.constant 0 : index
    %6 = vector.load %arg2[%c0_1, %c0_2] : memref<128x8xf32, #tpu.memory_space<vmem>>, vector<128x1xf32>
    %7 = vector.extract_strided_slice %4 {offsets = [0, 0], sizes = [1, 128], strides = [1, 1]} : vector<4x128xf32> to vector<1x128xf32>
    %8 = vector.broadcast %6 : vector<128x1xf32> to vector<128x128xf32>
    %9 = vector.broadcast %7 : vector<1x128xf32> to vector<128x128xf32>
    %10 = arith.mulf %8, %9 : vector<128x128xf32>
    %11 = vector.broadcast %5 : vector<128x1xf32> to vector<128x128xf32>
    %12 = arith.addf %11, %10 : vector<128x128xf32>
    %c0_3 = arith.constant 0 : index
    %c1 = arith.constant 1 : index
    %13 = vector.load %arg2[%c0_3, %c1] : memref<128x8xf32, #tpu.memory_space<vmem>>, vector<128x1xf32>
    %14 = vector.extract_strided_slice %4 {offsets = [1, 0], sizes = [1, 128], strides = [1, 1]} : vector<4x128xf32> to vector<1x128xf32>
    %15 = vector.broadcast %13 : vector<128x1xf32> to vector<128x128xf32>
    %16 = vector.broadcast %14 : vector<1x128xf32> to vector<128x128xf32>
    %17 = arith.mulf %15, %16 : vector<128x128xf32>
    %18 = arith.addf %12, %17 : vector<128x128xf32>
    %c0_4 = arith.constant 0 : index
    %c2 = arith.constant 2 : index
    %19 = vector.load %arg2[%c0_4, %c2] : memref<128x8xf32, #tpu.memory_space<vmem>>, vector<128x1xf32>
    %20 = vector.extract_strided_slice %4 {offsets = [2, 0], sizes = [1, 128], strides = [1, 1]} : vector<4x128xf32> to vector<1x128xf32>
    %21 = vector.broadcast %19 : vector<128x1xf32> to vector<128x128xf32>
    %22 = vector.broadcast %20 : vector<1x128xf32> to vector<128x128xf32>
    %23 = arith.mulf %21, %22 : vector<128x128xf32>
    %24 = arith.addf %18, %23 : vector<128x128xf32>
    %c0_5 = arith.constant 0 : index
    %c3 = arith.constant 3 : index
    %25 = vector.load %arg2[%c0_5, %c3] : memref<128x8xf32, #tpu.memory_space<vmem>>, vector<128x1xf32>
    %26 = vector.extract_strided_slice %4 {offsets = [3, 0], sizes = [1, 128], strides = [1, 1]} : vector<4x128xf32> to vector<1x128xf32>
    %27 = vector.broadcast %25 : vector<128x1xf32> to vector<128x128xf32>
    %28 = vector.broadcast %26 : vector<1x128xf32> to vector<128x128xf32>
    %29 = arith.mulf %27, %28 : vector<128x128xf32>
    %30 = arith.addf %24, %29 : vector<128x128xf32>
    %cst = arith.constant 0.000000e+00 : f32
    %31 = vector.broadcast %cst : f32 to vector<128x128xf32>
    %32 = arith.maximumf %30, %31 : vector<128x128xf32>
    %33 = arith.truncf %32 : vector<128x128xf32> to vector<128x128xbf16>
    %c0_6 = arith.constant 0 : index
    %c0_7 = arith.constant 0 : index
    %34 = vector.load %arg3[%c0_6, %c0_7] : memref<128x128xbf16, #tpu.memory_space<vmem>>, vector<128x128xbf16>
    %cst_8 = arith.constant dense<0.000000e+00> : vector<128x128xf32>
    %35 = tpu.matmul %34, %33, %cst_8 {dimension_numbers = #tpu.dot_dimension_numbers<[1], [0], [0], [1], [0, 0, 1, 1], [], []>} : vector<128x128xbf16>, vector<128x128xbf16>, vector<128x128xf32> -> vector<128x128xf32>
    %c0_9 = arith.constant 0 : index
    %c5 = arith.constant 5 : index
    %36 = vector.load %arg2[%c0_9, %c5] : memref<128x8xf32, #tpu.memory_space<vmem>>, vector<128x1xf32>
    %37 = vector.broadcast %36 : vector<128x1xf32> to vector<128x128xf32>
    %38 = arith.addf %35, %37 : vector<128x128xf32>
    %cst_10 = arith.constant 0.000000e+00 : f32
    %39 = vector.broadcast %cst_10 : f32 to vector<128x128xf32>
    %40 = arith.maximumf %38, %39 : vector<128x128xf32>
    %41 = arith.truncf %40 : vector<128x128xf32> to vector<128x128xbf16>
    %c0_11 = arith.constant 0 : index
    %c0_12 = arith.constant 0 : index
    %42 = vector.load %arg4[%c0_11, %c0_12] : memref<128x128xbf16, #tpu.memory_space<vmem>>, vector<128x128xbf16>
    %cst_13 = arith.constant dense<0.000000e+00> : vector<128x128xf32>
    %43 = tpu.matmul %42, %41, %cst_13 {dimension_numbers = #tpu.dot_dimension_numbers<[1], [0], [0], [1], [0, 0, 1, 1], [], []>} : vector<128x128xbf16>, vector<128x128xbf16>, vector<128x128xf32> -> vector<128x128xf32>
    %c0_14 = arith.constant 0 : index
    %c6 = arith.constant 6 : index
    %44 = vector.load %arg2[%c0_14, %c6] : memref<128x8xf32, #tpu.memory_space<vmem>>, vector<128x1xf32>
    %45 = vector.broadcast %44 : vector<128x1xf32> to vector<128x128xf32>
    %46 = arith.addf %43, %45 : vector<128x128xf32>
    %cst_15 = arith.constant 0.000000e+00 : f32
    %47 = vector.broadcast %cst_15 : f32 to vector<128x128xf32>
    %48 = arith.maximumf %46, %47 : vector<128x128xf32>
    %c0_16 = arith.constant 0 : index
    %c7 = arith.constant 7 : index
    %49 = vector.load %arg2[%c0_16, %c7] : memref<128x8xf32, #tpu.memory_space<vmem>>, vector<128x1xf32>
    %50 = vector.broadcast %49 : vector<128x1xf32> to vector<128x128xf32>
    %51 = arith.mulf %48, %50 : vector<128x128xf32>
    %cst_17 = arith.constant dense<0.000000e+00> : vector<128xf32>
    %52 = vector.multi_reduction <add>, %51, %cst_17 [0] : vector<128x128xf32> to vector<128xf32>
    %53 = vector.shape_cast %52 : vector<128xf32> to vector<1x128xf32>
    %c0_18 = arith.constant 0 : index
    %c0_19 = arith.constant 0 : index
    %54 = memref.load %arg5[%c0_18, %c0_19] : memref<1x1xf32, #tpu.memory_space<smem>>
    %55 = vector.broadcast %54 : f32 to vector<1x128xf32>
    %56 = arith.addf %53, %55 : vector<1x128xf32>
    %57 = arith.negf %56 : vector<1x128xf32>
    %58 = math.exp %57 : vector<1x128xf32>
    %cst_20 = arith.constant 1.000000e+00 : f32
    %59 = vector.broadcast %cst_20 : f32 to vector<1x128xf32>
    %60 = arith.addf %59, %58 : vector<1x128xf32>
    %61 = arith.divf %59, %60 : vector<1x128xf32>
    %c0_21 = arith.constant 0 : index
    %62 = arith.index_cast %1 : i32 to index
    %63 = vector.load %arg6[%c0_21, %62] : memref<1x128xf32, #tpu.memory_space<vmem>>, vector<1x128xf32>
    tpu.vector_store %arg6[%c0_21, %62], %61 {strides = array<i32>} : memref<1x128xf32, #tpu.memory_space<vmem>>, vector<1x128xf32>,
    %c1_i32 = arith.constant 1 : i32
    return
  }
  func.func @transform_0(%arg0: i32) -> (i32, i32) {
    %c0_i32 = arith.constant 0 : i32
    %c0_i32_0 = arith.constant 0 : i32
    return %c0_i32, %arg0 : i32, i32
  }
  func.func @transform_1(%arg0: i32) -> (i32, i32) {
    %c0_i32 = arith.constant 0 : i32
    %c0_i32_0 = arith.constant 0 : i32
    %c0_i32_1 = arith.constant 0 : i32
    return %c0_i32, %c0_i32_0 : i32, i32
  }
  func.func @transform_2(%arg0: i32) -> (i32, i32) {
    %c0_i32 = arith.constant 0 : i32
    %c0_i32_0 = arith.constant 0 : i32
    %c0_i32_1 = arith.constant 0 : i32
    return %c0_i32, %c0_i32_0 : i32, i32
  }
  func.func @transform_3(%arg0: i32) -> (i32, i32) {
    %c0_i32 = arith.constant 0 : i32
    %c0_i32_0 = arith.constant 0 : i32
    %c0_i32_1 = arith.constant 0 : i32
    return %c0_i32, %c0_i32_0 : i32, i32
  }
  func.func @transform_4(%arg0: i32) -> (i32, i32) {
    %c0_i32 = arith.constant 0 : i32
    %c0_i32_0 = arith.constant 0 : i32
    %c0_i32_1 = arith.constant 0 : i32
    return %c0_i32, %c0_i32_0 : i32, i32
  }
  func.func @transform_5(%arg0: i32) -> (i32, i32) {
    %c0_i32 = arith.constant 0 : i32
    %c0_i32_0 = arith.constant 0 : i32
    return %c0_i32, %arg0 : i32, i32
  }
}

</mosaic_0001>

<bundles_post_ra>
// kernel: ours_neural_4d_forward.1
= control target key start
LH: loop header
LB: loop body
LE: loop exit
PB: predicated region body
PF: predicated region fallthrough
CT: control target
= control target key end

     0   :  { %v1865_v0 = vmov 2   ;;  %v1862_v1 = vmov 4   ;;  %v1863_v6 = vmov 3   ;;  %v1861_v7 = vmov 1   ;;  %s1855_s1 = inlined_call_operand.vmem [shape: f32[128,8], index: 1, kind: input, shape index: {}]   ;;  %s1856_s0 = inlined_call_operand.vmem [shape: bf16[4,128], index: 0, kind: input, shape index: {}]   ;;  %s1857_s2 = inlined_call_operand.vmem [shape: bf16[128,128], index: 2, kind: input, shape index: {}]   ;;  %s1858_s3 = inlined_call_operand.vmem [shape: bf16[128,128], index: 3, kind: input, shape index: {}]   ;;  %s1859_s4 = inlined_call_operand.<no memory space> [shape: f32[1,1], index: 4, kind: input, shape index: {}]   ;;  %s1860_s5 = inlined_call_operand.vmem [shape: f32[1,128], index: 5, kind: output, shape index: {}]  }
   0x1   :  { %1279 = vset.pattern.permute.xlu0 %v1865_v0  ;;  %1270 = vset.pattern.permute.xlu1 %v1862_v1  ;;  %v1387_v2 = vld [vmem:[%s1855_s1 + $0x18] sm:$0xff]  ;;  %v1392_v3 = vld [vmem:[%s1855_s1] sm:$0xff]  ;;  %v1404_v5 = vld [vmem:[%s1855_s1 + $0x8] sm:$0xff]  ;;  %v1867_v9 = vmov 0   ;;  %v120_v46 = vlaneseq }
   0x2   :  { %333 = vperm.xlu0 %1279, %v1387_v2   ;;  %141 = vperm.xlu1 %1270, %v1392_v3   ;;  %v1399_v4 = vld [vmem:[%s1855_s1 + $0x20] sm:$0xff]  ;;  %v1415_v8 = vld [vmem:[%s1855_s1 + $0x10] sm:$0xff]  ;;  %v1423_v10 = vld [vmem:[%s1855_s1 + $0x48] sm:$0xff] }
   0x3   :  { %v1430_v11 = vld [vmem:[%s1855_s1 + $0x50] sm:$0xff]  ;;  %v1451_v12 = vld [vmem:[%s1855_s1 + $0x28] sm:$0xff]  ;;  %v1459_v13 = vld [vmem:[%s1855_s1 + $0x78] sm:$0xff]  ;;  %v121_v49 = vshrl.u32 %v120_v46, 7 }
   0x4   :  { %v1470_v14 = vld [vmem:[%s1855_s1 + $0x38] sm:$0xff]  ;;  %v1477_v15 = vld [vmem:[%s1855_s1 + $0x40] sm:$0xff]  ;;  %v1484_v16 = vld [vmem:[%s1855_s1 + $0x68] sm:$0xff] }
   0x5   :  { %v1492_v17 = vld [vmem:[%s1855_s1 + $0x70] sm:$0xff]  ;;  %v1554_v25 = vld [vmem:[%s1855_s1 + $0x58] sm:$0xff]  ;;  %v1588_v39 = vld [vmem:[%s1855_s1 + $0x60] sm:$0xff]  ;;  %v122_v52 = vsub.s32 0, %v121_v49  ;;  %v286_v56 = vsub.s32 1, %v121_v49  ;;  %v386_v62 = vsub.s32 2, %v121_v49 }
   0x6   :  { %337 = vperm.xlu0 %1279, %v1399_v4   ;;  %145 = vperm.xlu1 %1270, %v1404_v5   ;;  %v1500_v18 = vld [vmem:[%s1855_s1 + $0x30] sm:$0xff]  ;;  %v22_v50 = vld [vmem:[%s1856_s0] sm:$0x3]  ;;  %v486_v63 = vsub.s32 3, %v121_v49 }
   0x7   :  { %v23_v54 = vunpack.c.l.bf16 %v22_v50 }
   0x9   :  { %v1618_v57 = vrot.slane %v23_v54, %v122_v52  ;;  %v1626_v61 = vrot.slane %v23_v54, %v286_v56  ;;  %v1640_v49 = vrot.slane %v23_v54, %v486_v63 }
   0xa   :  { %1284 = vset.pattern.permute.xlu0 %v1863_v6  ;;  %1271 = vset.pattern.permute.xlu1 %v1861_v7 }
   0xb   :  { %433 = vperm.xlu0 %1284, %v1387_v2   ;;  %225 = vperm.xlu1 %1271, %v1404_v5  }
   0xf   :  { %437 = vperm.xlu0 %1284, %v1399_v4   ;;  %1272 = vset.pattern.permute.xlu1 %v1867_v9 }
  0x10   :  { %52 = vperm.xlu1 %1272, %v1415_v8  }
  0x13   :  { %457 = vperm.xlu0 %1284, %v1423_v10  }
  0x14   :  { %1273 = vset.pattern.permute.xlu1 %v1865_v0 }
  0x15   :  { %321 = vperm.xlu1 %1273, %v1392_v3  }
  0x17   :  { %461 = vperm.xlu0 %1284, %v1430_v11  }
  0x19   :  { %325 = vperm.xlu1 %1273, %v1404_v5  }
  0x1b   :  { %1303 = vset.pattern.permute.xlu0 %v1867_v9 }
  0x1c   :  { %42 = vperm.xlu0 %1303, %v1392_v3  }
  0x1d   :  { %1274 = vset.pattern.permute.xlu1 %v1862_v1 }
  0x1e   :  { %153 = vperm.xlu1 %1274, %v1387_v2  }
  0x20   :  { %47 = vperm.xlu0 %1303, %v1404_v5  }
  0x22   :  { %1275 = vset.pattern.permute.xlu1 %v1861_v7 }
  0x23   :  { %229 = vperm.xlu1 %1275, %v1415_v8  }
  0x24   :  { %57 = vperm.xlu0 %1303, %v1387_v2  }
  0x27   :  { %1276 = vset.pattern.permute.xlu1 %v1863_v6 }
  0x28   :  { %62 = vperm.xlu0 %1303, %v1399_v4   ;;  %421 = vperm.xlu1 %1276, %v1392_v3  }
  0x2c   :  { %87 = vperm.xlu0 %1303, %v1423_v10   ;;  %425 = vperm.xlu1 %1276, %v1404_v5  }
  0x30   :  { %92 = vperm.xlu0 %1303, %v1430_v11   ;;  %1277 = vset.pattern.permute.xlu1 %v1867_v9 }
  0x31   :  { %67 = vperm.xlu1 %1277, %v1451_v12  }
  0x34   :  { %117 = vperm.xlu0 %1303, %v1459_v13  }
  0x35   :  { %1278 = vset.pattern.permute.xlu1 %v1865_v0 }
  0x36   :  { %329 = vperm.xlu1 %1278, %v1415_v8  }
  0x38   :  { %1306 = vset.pattern.permute.xlu0 %v1862_v1 }
  0x39   :  { %149 = vperm.xlu0 %1306, %v1415_v8  }
  0x3a   :  { %1280 = vset.pattern.permute.xlu1 %v1862_v1 }
  0x3b   :  { %157 = vperm.xlu1 %1280, %v1399_v4  }
  0x3d   :  { %169 = vperm.xlu0 %1306, %v1470_v14  }
  0x3f   :  { %161 = vperm.xlu1 %1280, %v1451_v12  }
  0x41   :  { %173 = vperm.xlu0 %1306, %v1477_v15  }
  0x43   :  { %1281 = vset.pattern.permute.xlu1 %v1861_v7 }
  0x44   :  { %241 = vperm.xlu1 %1281, %v1451_v12  }
  0x45   :  { %193 = vperm.xlu0 %1306, %v1484_v16  }
  0x48   :  { %1282 = vset.pattern.permute.xlu1 %v1863_v6 }
  0x49   :  { %197 = vperm.xlu0 %1306, %v1492_v17   ;;  %429 = vperm.xlu1 %1282, %v1415_v8  }
  0x4d   :  { %1308 = vset.pattern.permute.xlu0 %v1861_v7  ;;  %1283 = vset.pattern.permute.xlu1 %v1867_v9 }
  0x4e   :  { %221 = vperm.xlu0 %1308, %v1392_v3   ;;  %72 = vperm.xlu1 %1283, %v1500_v18  }
  0x52   :  { %233 = vperm.xlu0 %1308, %v1387_v2   ;;  %77 = vperm.xlu1 %1283, %v1470_v14  }
  0x56   :  { %237 = vperm.xlu0 %1308, %v1399_v4   ;;  %1285 = vset.pattern.permute.xlu1 %v1865_v0 }
  0x57   :  { %341 = vperm.xlu1 %1285, %v1451_v12  }
  0x5a   :  { %257 = vperm.xlu0 %1308, %v1423_v10  }
  0x5b   :  { %1286 = vset.pattern.permute.xlu1 %v1862_v1 }
  0x5c   :  { %165 = vperm.xlu1 %1286, %v1500_v18  }
  0x5e   :  { %261 = vperm.xlu0 %1308, %v1430_v11  }
  0x60   :  { %1287 = vset.pattern.permute.xlu1 %v1861_v7 }
  0x61   :  { %245 = vperm.xlu1 %1287, %v1500_v18  }
  0x62   :  { %281 = vperm.xlu0 %1308, %v1459_v13  }
  0x65   :  { %249 = vperm.xlu1 %1287, %v1470_v14  }
  0x66   :  { %1311 = vset.pattern.permute.xlu0 %v1865_v0 }
  0x67   :  { %357 = vperm.xlu0 %1311, %v1423_v10  }
  0x69   :  { %1288 = vset.pattern.permute.xlu1 %v1863_v6 }
  0x6a   :  { %441 = vperm.xlu1 %1288, %v1451_v12  }
  0x6b   :  { %361 = vperm.xlu0 %1311, %v1430_v11  }
  0x6e   :  { %1289 = vset.pattern.permute.xlu1 %v1867_v9 }
  0x6f   :  { %82 = vperm.xlu1 %1289, %v1477_v15   ;;  %377 = vperm.xlu0 %1311, %v1492_v17  }
  0x73   :  { %1290 = vset.pattern.permute.xlu1 %v1865_v0  ;;  %1315 = vset.pattern.permute.xlu0 %v1863_v6 }
  0x74   :  { %345 = vperm.xlu1 %1290, %v1500_v18   ;;  %481 = vperm.xlu0 %1315, %v1459_v13  }
  0x78   :  { %349 = vperm.xlu1 %1290, %v1470_v14  }
  0x7c   :  { %1291 = vset.pattern.permute.xlu1 %v1862_v1 }
  0x7d   :  { %177 = vperm.xlu1 %1291, %v1423_v10  }
  0x81   :  { %1292 = vset.pattern.permute.xlu1 %v1861_v7  ;;  %v1535_v19 = vpop.permute.xlu1 %141  ;;  %v1537_v20 = vpop.permute.xlu0 %333 }
  0x82   :  { %253 = vperm.xlu1 %1292, %v1477_v15  }
  0x85   :  { %v1540_v21 = vpop.permute.xlu1 %145  ;;  %v1542_v22 = vpop.permute.xlu0 %337 }
  0x86   :  { %1293 = vset.pattern.permute.xlu1 %v1863_v6 }
  0x87   :  { %445 = vperm.xlu1 %1293, %v1500_v18  }
  0x8a   :  { %v1546_v23 = vpop.permute.xlu1 %225  ;;  %v1548_v24 = vpop.permute.xlu0 %433 }
  0x8b   :  { %449 = vperm.xlu1 %1293, %v1470_v14  }
  0x8e   :  { %v1556_v26 = vpop.permute.xlu0 %437 }
  0x8f   :  { %1294 = vset.pattern.permute.xlu1 %v1867_v9  ;;  %v1559_v27 = vpop.permute.xlu1 %52 }
  0x90   :  { %97 = vperm.xlu1 %1294, %v1554_v25   ;;  %v126_v52 = vmul.f32 %v1618_v57, %v1559_v27 }
  0x92   :  { %v1562_v28 = vpop.permute.xlu0 %457 }
  0x94   :  { %1295 = vset.pattern.permute.xlu1 %v1865_v0  ;;  %v1565_v29 = vpop.permute.xlu1 %321 }
  0x95   :  { %353 = vperm.xlu1 %1295, %v1477_v15  }
  0x96   :  { %v1568_v30 = vpop.permute.xlu0 %461 }
  0x98   :  { %v1570_v31 = vpop.permute.xlu1 %325 }
  0x99   :  { %1296 = vset.pattern.permute.xlu1 %v1862_v1 }
  0x9a   :  { %181 = vperm.xlu1 %1296, %v1430_v11  }
  0x9b   :  { %v43_v32 = vpop.permute.xlu0 %42 }
  0x9c   :  { %v124_v56 = vmul.f32 %v1618_v57, %v43_v32 }
  0x9d   :  { %v1574_v33 = vpop.permute.xlu1 %153 }
  0x9e   :  { %185 = vperm.xlu1 %1296, %v1554_v25   ;;  %v204_v27 = vadd.f32 %v1535_v19, %v124_v56 }
  0x9f   :  { %v48_v34 = vpop.permute.xlu0 %47 }
  0xa0   :  { %v125_v58 = vmul.f32 %v1618_v57, %v48_v34  ;;  %v289_v34 = vmul.f32 %v1626_v61, %v1546_v23 }
  0xa2   :  { %1297 = vset.pattern.permute.xlu1 %v1861_v7  ;;  %v230_v35 = vpop.permute.xlu1 %229  ;;  %v205_v46 = vadd.f32 %v1540_v21, %v125_v58 }
  0xa3   :  { %v58_v36 = vpop.permute.xlu0 %57  ;;  %265 = vperm.xlu1 %1297, %v1554_v25   ;;  %v290_v32 = vmul.f32 %v1626_v61, %v230_v35 }
  0xa4   :  { %v305_v21 = vadd.f32 %v289_v34, %v205_v46 }
  0xa7   :  { %1298 = vset.pattern.permute.xlu1 %v1863_v6  ;;  %v1580_v37 = vpop.permute.xlu1 %421  ;;  %v1582_v38 = vpop.permute.xlu0 %62 }
  0xa8   :  { %453 = vperm.xlu1 %1298, %v1477_v15   ;;  %v488_v19 = vmul.f32 %v1640_v49, %v1580_v37  ;;  %v128_v35 = vmul.f32 %v1618_v57, %v1582_v38 }
  0xab   :  { %v426_v40 = vpop.permute.xlu1 %425  ;;  %v1590_v41 = vpop.permute.xlu0 %87 }
  0xac   :  { %1299 = vset.pattern.permute.xlu1 %v1867_v9  ;;  %v489_v23 = vmul.f32 %v1640_v49, %v426_v40 }
  0xad   :  { %102 = vperm.xlu1 %1299, %v1588_v39  }
  0xaf   :  { %v1594_v42 = vpop.permute.xlu0 %92 }
  0xb0   :  { %v1596_v43 = vpop.permute.xlu1 %67 }
  0xb1   :  { %107 = vperm.xlu1 %1299, %v1484_v16  }
  0xb3   :  { %v1599_v44 = vpop.permute.xlu0 %117 }
  0xb5   :  { %1300 = vset.pattern.permute.xlu1 %v1865_v0  ;;  %v330_v45 = vpop.permute.xlu1 %329  ;;  %v127_v0 = vmul.f32 %v1618_v57, %v58_v36 }
  0xb6   :  { %365 = vperm.xlu1 %1300, %v1554_v25  }
  0xb8   :  { %v150_v47 = vpop.permute.xlu0 %149 }
  0xb9   :  { %v206_v58 = vadd.f32 %v150_v47, %v126_v52  ;;  %v1871_v52 = vmov 2  }
  0xba   :  { %1301 = vset.pattern.permute.xlu1 %v1862_v1  ;;  %v1604_v48 = vpop.permute.xlu1 %157  ;;  %v1638_v1 = vrot.slane %v23_v54, %v386_v62 }
  0xbb   :  { %189 = vperm.xlu1 %1301, %v1588_v39   ;;  %v306_v40 = vadd.f32 %v290_v32, %v206_v58 }
  0xbc   :  { %v1610_v51 = vpop.permute.xlu0 %169  ;;  %v388_v36 = vmul.f32 %v1638_v1, %v1565_v29  ;;  %v392_v56 = vmul.f32 %v1638_v1, %v1542_v22 }
  0xbe   :  { %v1612_v53 = vpop.permute.xlu1 %161 }
  0xbf   :  { %1302 = vset.pattern.permute.xlu1 %v1861_v7 }
  0xc0   :  { %269 = vperm.xlu1 %1302, %v1588_v39   ;;  %v1616_v55 = vpop.permute.xlu0 %173 }
  0xc3   :  { %v1621_v59 = vpop.permute.xlu1 %241 }
  0xc4   :  { %273 = vperm.xlu1 %1302, %v1484_v16   ;;  %v1624_v60 = vpop.permute.xlu0 %193 }
  0xc5   :  { %1868 = vst [vmem:[#allocation3_spill] sm:$0xff] %v1624_v60 }
  0xc8   :  { %1304 = vset.pattern.permute.xlu1 %v1863_v6  ;;  %v430_v50 = vpop.permute.xlu1 %429  ;;  %v1630_v7 = vpop.permute.xlu0 %197  ;;  %v389_v6 = vmul.f32 %v1638_v1, %v1570_v31  ;;  %v391_v31 = vmul.f32 %v1638_v1, %v1537_v20 }
  0xc9   :  { %1869 = vst [vmem:[#allocation4_spill] sm:$0xff] %v1630_v7  ;;  %465 = vperm.xlu1 %1304, %v1554_v25   ;;  %v1870_v7 = vmov 0   ;;  %v490_v20 = vmul.f32 %v1640_v49, %v430_v50 }
  0xca   :  { %v405_v47 = vadd.f32 %v389_v6, %v305_v21  ;;  %v390_v6 = vmul.f32 %v1638_v1, %v330_v45  ;;  %v208_v45 = vadd.f32 %v1604_v48, %v128_v35 }
  0xcd   :  { %v222_v9 = vpop.permute.xlu0 %221  ;;  %1305 = vset.pattern.permute.xlu1 %v1870_v7  ;;  %v1647_v60 = vpop.permute.xlu1 %72  ;;  %v207_v7 = vadd.f32 %v1574_v33, %v127_v0  ;;  %v491_v0 = vmul.f32 %v1640_v49, %v1548_v24  ;;  %v406_v33 = vadd.f32 %v390_v6, %v306_v40  ;;  %v492_v24 = vmul.f32 %v1640_v49, %v1556_v26 }
  0xce   :  { %v288_v54 = vmul.f32 %v1626_v61, %v222_v9  ;;  %112 = vperm.xlu1 %1305, %v1492_v17   ;;  %v505_v9 = vadd.f32 %v489_v23, %v405_v47  ;;  %v293_v6 = vmul.f32 %v1626_v61, %v1621_v59 }
  0xcf   :  { %v506_v58 = vadd.f32 %v490_v20, %v406_v33 }
  0xd0   :  { %v304_v62 = vadd.f32 %v288_v54, %v204_v27  ;;  %v521_v50 = vmax.f32 %v505_v9, 0.0  ;;  %v1873_v9 = vmov 1  }
  0xd1   :  { %v234_v63 = vpop.permute.xlu0 %233  ;;  %v1662_v46 = vpop.permute.xlu1 %77 }
  0xd2   :  { %v404_v34 = vadd.f32 %v388_v36, %v304_v62  ;;  %v291_v29 = vmul.f32 %v1626_v61, %v234_v63  ;;  %1307 = vset.pattern.permute.xlu1 %v1871_v52  ;;  %v522_v62 = vmax.f32 %v506_v58, 0.0  ;;  %v129_v63 = vmul.f32 %v1618_v57, %v1596_v43 }
  0xd3   :  { %369 = vperm.xlu1 %1307, %v1588_v39  }
  0xd4   :  { %v307_v37 = vadd.f32 %v291_v29, %v207_v7  ;;  %v504_v38 = vadd.f32 %v488_v19, %v404_v34  ;;  %v1872_v7 = vmov 4   ;;  %v1874_v34 = vmov 3  }
  0xd5   :  { %v238_v21 = vpop.permute.xlu0 %237  ;;  %v209_v29 = vadd.f32 %v1612_v53, %v129_v63 }
  0xd6   :  { %v407_v23 = vadd.f32 %v391_v31, %v307_v37  ;;  %v292_v27 = vmul.f32 %v1626_v61, %v238_v21  ;;  %v342_v32 = vpop.permute.xlu1 %341  ;;  %v520_v54 = vmax.f32 %v504_v38, 0.0 }
  0xd7   :  { %373 = vperm.xlu1 %1307, %v1484_v16   ;;  %v309_v33 = vadd.f32 %v293_v6, %v209_v29 }
  0xd8   :  { %v308_v47 = vadd.f32 %v292_v27, %v208_v45  ;;  %v536_v36 = vpack.c.bf16 %v521_v50, %v520_v54  ;;  %v507_v40 = vadd.f32 %v491_v0, %v407_v23  ;;  %v393_v0 = vmul.f32 %v1638_v1, %v342_v32 }
  0xd9   :  { %v258_v37 = vpop.permute.xlu0 %257 }
  0xda   :  { %v408_v22 = vadd.f32 %v392_v56, %v308_v47  ;;  %1198 = vmatprep.subr.bf16.mxu0 %v536_v36  ;;  %v523_v48 = vmax.f32 %v507_v40, 0.0  ;;  %v409_v56 = vadd.f32 %v393_v0, %v309_v33 }
  0xdb   :  { %1309 = vset.pattern.permute.xlu1 %v1872_v7  ;;  %v166_v19 = vpop.permute.xlu1 %165  ;;  %1199 = vmatpush3.bf16.msra.mxu0 %v536_v36 }
  0xdc   :  { %201 = vperm.xlu1 %1309, %v1459_v13   ;;  %v537_v31 = vpack.c.bf16 %v523_v48, %v522_v62  ;;  %v508_v35 = vadd.f32 %v492_v24, %v408_v22  ;;  %v297_v24 = vmul.f32 %v1626_v61, %v258_v37  ;;  %v1324_v62 = vld [vmem:[%s1857_s2] sm:$0xff]   ;;  %v497_v22 = vmul.f32 %v1640_v49, %v1562_v28 }
  0xdd   :  { %v262_v53 = vpop.permute.xlu0 %261  ;;  %1214 = vmatprep.mubr.bf16.mxu0 %v1324_v62 }
  0xde   :  { %1200 = vmatprep.subr.bf16.mxu0 %v537_v31  ;;  %v524_v50 = vmax.f32 %v508_v35, 0.0  ;;  %v131_v35 = vmul.f32 %v1618_v57, %v1662_v46 }
  0xdf   :  { %1201 = vmatpush3.bf16.msra.mxu0 %v537_v31 }
  0xe0   :  { %1310 = vset.pattern.permute.xlu1 %v1873_v9  ;;  %v246_v26 = vpop.permute.xlu1 %245  ;;  %v211_v28 = vadd.f32 %v1610_v51, %v131_v35  ;;  %v134_v51 = vmul.f32 %v1618_v57, %v1594_v42 }
  0xe1   :  { %277 = vperm.xlu1 %1310, %v1492_v17   ;;  %v1698_v27 = vpop.permute.xlu0 %281  ;;  %v294_v9 = vmul.f32 %v1626_v61, %v246_v26 }
  0xe4   :  { %v250_v20 = vpop.permute.xlu1 %249 }
  0xe5   :  { %1312 = vset.pattern.permute.xlu1 %v1874_v34 }
  0xe6   :  { %469 = vperm.xlu1 %1312, %v1588_v39   ;;  %v358_v54 = vpop.permute.xlu0 %357 }
  0xe7   :  { %v397_v40 = vmul.f32 %v1638_v1, %v358_v54 }
  0xe9   :  { %v442_v38 = vpop.permute.xlu1 %441 }
  0xea   :  { %v493_v45 = vmul.f32 %v1640_v49, %v442_v38  ;;  %473 = vperm.xlu1 %1312, %v1484_v16  }
  0xec   :  { %v509_v43 = vadd.f32 %v493_v45, %v409_v56 }
  0xee   :  { %v525_v21 = vmax.f32 %v509_v43, 0.0  ;;  %1313 = vset.pattern.permute.xlu1 %v1871_v52  ;;  %v1693_v59 = vpop.permute.xlu1 %82  ;;  %v133_v52 = vmul.f32 %v1618_v57, %v1590_v41  ;;  %v130_v41 = vmul.f32 %v1618_v57, %v1647_v60 }
  0xef   :  { %381 = vperm.xlu1 %1313, %v1459_v13  }
  0xf0   :  { %v538_v58 = vpack.c.bf16 %v525_v21, %v524_v50  ;;  %v210_v6 = vadd.f32 %v166_v19, %v130_v41 }
  0xf2   :  { %1202 = vmatprep.subr.bf16.mxu0 %v538_v58  ;;  %v310_v33 = vadd.f32 %v294_v9, %v210_v6 }
  0xf3   :  { %1314 = vset.pattern.permute.xlu1 %v1874_v34  ;;  %v346_v23 = vpop.permute.xlu1 %345  ;;  %1203 = vmatpush3.bf16.msra.mxu0 %v538_v58  ;;  %v295_v34 = vmul.f32 %v1626_v61, %v250_v20 }
  0xf4   :  { %477 = vperm.xlu1 %1314, %v1492_v17   ;;  %v394_v29 = vmul.f32 %v1638_v1, %v346_v23 }
  0xf5   :  { %v311_v60 = vadd.f32 %v295_v34, %v211_v28 }
  0xf6   :  { %v410_v56 = vadd.f32 %v394_v29, %v310_v33 }
  0xf7   :  { %v350_v32 = vpop.permute.xlu1 %349 }
  0xf8   :  { %v395_v37 = vmul.f32 %v1638_v1, %v350_v32  ;;  %v362_v32 = vpop.permute.xlu0 %361 }
  0xfa   :  { %v411_v46 = vadd.f32 %v395_v37, %v311_v60 }
  0xfc   :  { %v178_v47 = vpop.permute.xlu1 %177 }
  0xfd   :  { %v213_v36 = vadd.f32 %v178_v47, %v133_v52  ;;  %v298_v52 = vmul.f32 %v1626_v61, %v262_v53  ;;  %v132_v53 = vmul.f32 %v1618_v57, %v1693_v59 }
  0xff   :  { %v313_v48 = vadd.f32 %v297_v24, %v213_v36  ;;  %v1349_v24 = vmov 5   ;;  %v398_v36 = vmul.f32 %v1638_v1, %v362_v32  ;;  %v212_v35 = vadd.f32 %v1616_v55, %v132_v53 }
 0x100   :  { %1316 = vset.pattern.permute.xlu1 %v1349_v24  ;;  %1317 = vset.pattern.permute.xlu0 %v1349_v24  ;;  %v139_v24 = vmul.f32 %v1618_v57, %v1599_v44  ;;  %v1875_v44 = vld [vmem:[#allocation3_spill] sm:$0xff] }
 0x101   :  { %v413_v7 = vadd.f32 %v397_v40, %v313_v48  ;;  %v254_v31 = vpop.permute.xlu1 %253  ;;  %561 = vperm.xlu1 %1316, %v1392_v3   ;;  %569 = vperm.xlu0 %1317, %v1415_v8  }
 0x103   :  { %v513_v63 = vadd.f32 %v497_v22, %v413_v7  ;;  %v498_v22 = vmul.f32 %v1640_v49, %v1568_v30  ;;  %v296_v7 = vmul.f32 %v1626_v61, %v254_v31 }
 0x105   :  { %565 = vperm.xlu1 %1316, %v1404_v5   ;;  %581 = vperm.xlu0 %1317, %v1451_v12   ;;  %v312_v9 = vadd.f32 %v296_v7, %v212_v35  ;;  %v529_v31 = vmax.f32 %v513_v63, 0.0 }
 0x106   :  { %v446_v0 = vpop.permute.xlu1 %445 }
 0x107   :  { %v494_v38 = vmul.f32 %v1640_v49, %v446_v0 }
 0x109   :  { %v510_v43 = vadd.f32 %v494_v38, %v410_v56  ;;  %573 = vperm.xlu1 %1316, %v1387_v2   ;;  %589 = vperm.xlu0 %1317, %v1470_v14  }
 0x10a   :  { %v450_v45 = vpop.permute.xlu1 %449 }
 0x10b   :  { %v495_v26 = vmul.f32 %v1640_v49, %v450_v45  ;;  %v526_v21 = vmax.f32 %v510_v43, 0.0 }
 0x10d   :  { %v511_v19 = vadd.f32 %v495_v26, %v411_v46  ;;  %577 = vperm.xlu1 %1316, %v1399_v4   ;;  %597 = vperm.xlu0 %1317, %v1423_v10  }
 0x10f   :  { %v527_v20 = vmax.f32 %v511_v19, 0.0  ;;  %v98_v50 = vpop.permute.xlu1 %97 }
 0x110   :  { %v135_v60 = vmul.f32 %v1618_v57, %v98_v50 }
 0x111   :  { %v539_v58 = vpack.c.bf16 %v527_v20, %v526_v21  ;;  %585 = vperm.xlu1 %1316, %v1500_v18   ;;  %605 = vperm.xlu0 %1317, %v1554_v25  }
 0x113   :  { %1204 = vmatprep.subr.bf16.mxu0 %v539_v58 }
 0x114   :  { %v354_v23 = vpop.permute.xlu1 %353  ;;  %1205 = vmatpush3.bf16.msra.mxu0 %v539_v58 }
 0x115   :  { %v396_v30 = vmul.f32 %v1638_v1, %v354_v23  ;;  %593 = vperm.xlu1 %1316, %v1477_v15   ;;  %613 = vperm.xlu0 %1317, %v1484_v16  }
 0x117   :  { %v412_v34 = vadd.f32 %v396_v30, %v312_v9 }
 0x119   :  { %v182_v54 = vpop.permute.xlu1 %181  ;;  %601 = vperm.xlu1 %1316, %v1430_v11   ;;  %621 = vperm.xlu0 %1317, %v1459_v13  }
 0x11a   :  { %v214_v47 = vadd.f32 %v182_v54, %v134_v51 }
 0x11c   :  { %v314_v40 = vadd.f32 %v298_v52, %v214_v47 }
 0x11d   :  { %v186_v62 = vpop.permute.xlu1 %185  ;;  %609 = vperm.xlu1 %1316, %v1588_v39  }
 0x11e   :  { %v414_v42 = vadd.f32 %v398_v36, %v314_v40  ;;  %v215_v46 = vadd.f32 %v186_v62, %v135_v60  ;;  %v303_v36 = vmul.f32 %v1626_v61, %v1698_v27 }
 0x120   :  { %v514_v48 = vadd.f32 %v498_v22, %v414_v42 }
 0x121   :  { %617 = vperm.xlu1 %1316, %v1492_v17  }
 0x122   :  { %v266_v41 = vpop.permute.xlu1 %265  ;;  %v530_v23 = vmax.f32 %v514_v48, 0.0 }
 0x123   :  { %v299_v56 = vmul.f32 %v1626_v61, %v266_v41 }
 0x125   :  { %v315_v26 = vadd.f32 %v299_v56, %v215_v46  ;;  %v1876_v56 = vld [vmem:[#allocation4_spill] sm:$0xff] }
 0x127   :  { %v454_v6 = vpop.permute.xlu1 %453 }
 0x128   :  { %v496_v59 = vmul.f32 %v1640_v49, %v454_v6 }
 0x12a   :  { %v512_v29 = vadd.f32 %v496_v59, %v412_v34 }
 0x12c   :  { %v528_v0 = vmax.f32 %v512_v29, 0.0  ;;  %v103_v28 = vpop.permute.xlu1 %102 }
 0x12d   :  { %v136_v42 = vmul.f32 %v1618_v57, %v103_v28 }
 0x12e   :  { %v540_v55 = vpack.c.bf16 %v529_v31, %v528_v0  ;;  %v378_v31 = vpop.permute.xlu0 %377 }
 0x130   :  { %v108_v33 = vpop.permute.xlu1 %107  ;;  %1206 = vmatprep.subr.bf16.mxu0 %v540_v55 }
 0x131   :  { %1207 = vmatpush3.bf16.msra.mxu0 %v540_v55  ;;  %v137_v53 = vmul.f32 %v1618_v57, %v108_v33 }
 0x132   :  { %v482_v60 = vpop.permute.xlu0 %481 }
 0x133   :  { %v217_v9 = vadd.f32 %v1875_v44, %v137_v53  ;;  %v1332_v53 = vld [vmem:[%s1858_s3] sm:$0xff]  }
 0x134   :  { %1246 = vmatprep.mubr.bf16.mxu1 %v1332_v53 }
 0x135   :  { %v366_v37 = vpop.permute.xlu1 %365 }
 0x136   :  { %v399_v43 = vmul.f32 %v1638_v1, %v366_v37 }
 0x138   :  { %v415_v21 = vadd.f32 %v399_v43, %v315_v26 }
 0x13a   :  { %v190_v38 = vpop.permute.xlu1 %189 }
 0x13b   :  { %v216_v7 = vadd.f32 %v190_v38, %v136_v42  ;;  %v1331_v42 = vld [vmem:[%s1857_s2 + $0x38] sm:$0xff]  }
 0x13f   :  { %v270_v63 = vpop.permute.xlu1 %269 }
 0x140   :  { %v300_v48 = vmul.f32 %v1626_v61, %v270_v63 }
 0x142   :  { %v316_v6 = vadd.f32 %v300_v48, %v216_v7  ;;  %v1350_v48 = vmov 6   ;;  %v1351_v7 = vmov 7  }
 0x143   :  { %v274_v45 = vpop.permute.xlu1 %273  ;;  %1318 = vset.pattern.permute.xlu1 %v1350_v48  ;;  %1319 = vset.pattern.permute.xlu0 %v1350_v48 }
 0x144   :  { %v301_v41 = vmul.f32 %v1626_v61, %v274_v45  ;;  %810 = vperm.xlu1 %1318, %v1392_v3   ;;  %814 = vperm.xlu0 %1319, %v1404_v5  }
 0x146   :  { %v317_v59 = vadd.f32 %v301_v41, %v217_v9 }
 0x148   :  { %v466_v19 = vpop.permute.xlu1 %465  ;;  %818 = vperm.xlu1 %1318, %v1415_v8   ;;  %1320 = vset.pattern.permute.xlu0 %v1351_v7 }
 0x149   :  { %v499_v20 = vmul.f32 %v1640_v49, %v466_v19  ;;  %1035 = vperm.xlu0 %1320, %v1392_v3  }
 0x14b   :  { %v515_v58 = vadd.f32 %v499_v20, %v415_v21  ;;  %v402_v20 = vmul.f32 %v1638_v1, %v378_v31 }
 0x14c   :  { %822 = vperm.xlu1 %1318, %v1387_v2  }
 0x14d   :  { %v531_v51 = vmax.f32 %v515_v58, 0.0  ;;  %v113_v32 = vpop.permute.xlu1 %112  ;;  %1043 = vperm.xlu0 %1320, %v1415_v8  }
 0x14e   :  { %v138_v28 = vmul.f32 %v1618_v57, %v113_v32  ;;  %v503_v57 = vmul.f32 %v1640_v49, %v482_v60 }
 0x14f   :  { %v541_v52 = vpack.c.bf16 %v531_v51, %v530_v23 }
 0x150   :  { %v218_v45 = vadd.f32 %v1876_v56, %v138_v28  ;;  %1321 = vset.pattern.permute.xlu1 %v1351_v7 }
 0x151   :  { %1208 = vmatprep.subr.bf16.mxu0 %v541_v52  ;;  %1039 = vperm.xlu1 %1321, %v1404_v5  }
 0x152   :  { %v370_v54 = vpop.permute.xlu1 %369  ;;  %1209 = vmatpush3.bf16.msra.mxu0 %v541_v52  ;;  %1047 = vperm.xlu0 %1320, %v1387_v2  }
 0x153   :  { %v400_v35 = vmul.f32 %v1638_v1, %v370_v54 }
 0x155   :  { %v416_v29 = vadd.f32 %v400_v35, %v316_v6  ;;  %1322 = vset.pattern.permute.xlu1 %v1350_v48 }
 0x156   :  { %v374_v50 = vpop.permute.xlu1 %373  ;;  %826 = vperm.xlu1 %1322, %v1399_v4   ;;  %1051 = vperm.xlu0 %1320, %v1399_v4  }
 0x157   :  { %v401_v27 = vmul.f32 %v1638_v1, %v374_v50 }
 0x159   :  { %v417_v55 = vadd.f32 %v401_v27, %v317_v59 }
 0x15a   :  { %830 = vperm.xlu1 %1322, %v1451_v12   ;;  %1055 = vperm.xlu0 %1320, %v1451_v12  }
 0x15b   :  { %v202_v47 = vpop.permute.xlu1 %201 }
 0x15c   :  { %v219_v40 = vadd.f32 %v202_v47, %v139_v24 }
 0x15e   :  { %v319_v62 = vadd.f32 %v303_v36, %v219_v40  ;;  %v1326_v36 = vld [vmem:[%s1857_s2 + $0x10] sm:$0xff]   ;;  %v1328_v40 = vld [vmem:[%s1857_s2 + $0x20] sm:$0xff]   ;;  %834 = vperm.xlu1 %1322, %v1500_v18   ;;  %1059 = vperm.xlu0 %1320, %v1500_v18  }
 0x160   :  { %v278_v22 = vpop.permute.xlu1 %277 }
 0x161   :  { %v302_v38 = vmul.f32 %v1626_v61, %v278_v22  ;;  %v1330_v22 = vld [vmem:[%s1857_s2 + $0x30] sm:$0xff]  }
 0x162   :  { %838 = vperm.xlu1 %1322, %v1470_v14   ;;  %1063 = vperm.xlu0 %1320, %v1470_v14  }
 0x163   :  { %v318_v21 = vadd.f32 %v302_v38, %v218_v45 }
 0x165   :  { %v470_v30 = vpop.permute.xlu1 %469  ;;  %v418_v61 = vadd.f32 %v402_v20, %v318_v21 }
 0x166   :  { %v500_v34 = vmul.f32 %v1640_v49, %v470_v30  ;;  %842 = vperm.xlu1 %1322, %v1477_v15   ;;  %1067 = vperm.xlu0 %1320, %v1477_v15  }
 0x168   :  { %v516_v33 = vadd.f32 %v500_v34, %v416_v29 }
 0x169   :  { %v474_v0 = vpop.permute.xlu1 %473 }
 0x16a   :  { %v501_v37 = vmul.f32 %v1640_v49, %v474_v0  ;;  %v532_v46 = vmax.f32 %v516_v33, 0.0  ;;  %846 = vperm.xlu1 %1322, %v1423_v10   ;;  %1071 = vperm.xlu0 %1320, %v1423_v10  }
 0x16c   :  { %v517_v63 = vadd.f32 %v501_v37, %v417_v55 }
 0x16e   :  { %v533_v43 = vmax.f32 %v517_v63, 0.0  ;;  %v382_v26 = vpop.permute.xlu1 %381  ;;  %850 = vperm.xlu1 %1322, %v1430_v11   ;;  %1075 = vperm.xlu0 %1320, %v1430_v11  }
 0x16f   :  { %v403_v19 = vmul.f32 %v1638_v1, %v382_v26  ;;  %v1325_v1 = vld [vmem:[%s1857_s2 + $0x8] sm:$0xff]  }
 0x170   :  { %v542_v58 = vpack.c.bf16 %v533_v43, %v532_v46 }
 0x171   :  { %v419_v23 = vadd.f32 %v403_v19, %v319_v62  ;;  %v1329_v62 = vld [vmem:[%s1857_s2 + $0x28] sm:$0xff]  }
 0x172   :  { %1210 = vmatprep.subr.bf16.mxu0 %v542_v58  ;;  %854 = vperm.xlu1 %1322, %v1554_v25  }
 0x173   :  { %v478_v51 = vpop.permute.xlu1 %477  ;;  %1211 = vmatpush3.bf16.msra.mxu0 %v542_v58  ;;  %v519_v32 = vadd.f32 %v503_v57, %v419_v23  ;;  %1079 = vperm.xlu0 %1320, %v1554_v25  }
 0x174   :  { %v502_v52 = vmul.f32 %v1640_v49, %v478_v51  ;;  %v1327_v49 = vld [vmem:[%s1857_s2 + $0x18] sm:$0xff]  }
 0x175   :  { %v535_v50 = vmax.f32 %v519_v32, 0.0 }
 0x176   :  { %v518_v54 = vadd.f32 %v502_v52, %v418_v61  ;;  %858 = vperm.xlu1 %1322, %v1588_v39  }
 0x177   :  { %1083 = vperm.xlu0 %1320, %v1588_v39  }
 0x178   :  { %v534_v24 = vmax.f32 %v518_v54, 0.0 }
 0x17a   :  { %v543_v47 = vpack.c.bf16 %v535_v50, %v534_v24  ;;  %862 = vperm.xlu1 %1322, %v1484_v16  }
 0x17b   :  { %1087 = vperm.xlu0 %1320, %v1484_v16  }
 0x17c   :  { %1212 = vmatprep.subr.bf16.mxu0 %v543_v47 }
 0x17d   :  { %1213 = vmatpush3.bf16.msra.mxu0 %v543_v47 }
 0x17e   :  { %866 = vperm.xlu1 %1322, %v1492_v17  }
 0x17f   :  { %1095 = vperm.xlu0 %1320, %v1459_v13  }
 0x180   :  { %1215 = vmatmul.mubr.bf16.vlgmr.msra.gmra.mrb[0].mxu0 %v1325_v1  ;;  %v562_v2 = vpop.permute.xlu1 %561  ;;  %v570_v5 = vpop.permute.xlu0 %569 }
 0x181   :  { %1218 = vmatprep.mubr.bf16.mxu0 %v1326_v36 }
 0x182   :  { %870 = vperm.xlu1 %1322, %v1459_v13  }
 0x184   :  { %v566_v3 = vpop.permute.xlu1 %565  ;;  %v582_v10 = vpop.permute.xlu0 %581 }
 0x186   :  { %1323 = vset.pattern.permute.xlu1 %v1351_v7 }
 0x187   :  { %1091 = vperm.xlu1 %1323, %v1492_v17  }
 0x188   :  { %1219 = vmatmul.mubr.bf16.gmra.mrb[4].mxu0 %v1327_v49  ;;  %v574_v4 = vpop.permute.xlu1 %573  ;;  %v590_v16 = vpop.permute.xlu0 %589 }
 0x189   :  { %1222 = vmatprep.mubr.bf16.mxu0 %v1328_v40 }
 0x18c   :  { %v578_v8 = vpop.permute.xlu1 %577  ;;  %v598_v27 = vpop.permute.xlu0 %597 }
 0x190   :  { %1223 = vmatmul.mubr.bf16.gmra.mrb[8].mxu0 %v1329_v62  ;;  %v586_v11 = vpop.permute.xlu1 %585  ;;  %v606_v56 = vpop.permute.xlu0 %605 }
 0x191   :  { %1226 = vmatprep.mubr.bf16.mxu0 %v1330_v22 }
 0x194   :  { %v594_v44 = vpop.permute.xlu1 %593  ;;  %v614_v32 = vpop.permute.xlu0 %613 }
 0x198   :  { %1227 = vmatmul.mubr.bf16.gmra.mrb[12].mxu0 %v1331_v42  ;;  %v602_v37 = vpop.permute.xlu1 %601  ;;  %v622_v42 = vpop.permute.xlu0 %621 }
 0x19c   :  { %v610_v57 = vpop.permute.xlu1 %609 }
 0x1a0   :  { %v618_v36 = vpop.permute.xlu1 %617 }
 0x253   :  { %v1216_v12 = vpop.f32.mrb[0].mxu0 }
 0x254   :  { %v715_v14 = vadd.f32 %v1216_v12, %v570_v5  ;;  %v706_v15 = vpop.f32.mrb[1].mxu0 }
 0x255   :  { %v707_v18 = vadd.f32 %v706_v15, %v562_v2  ;;  %v1217_v25 = vpop.f32.mrb[2].mxu0  ;;  %v1334_v15 = vld [vmem:[%s1858_s3 + $0x10] sm:$0xff]  }
 0x256   :  { %v718_v39 = vadd.f32 %v1217_v25, %v574_v4  ;;  %v709_v41 = vpop.f32.mrb[3].mxu0  ;;  %v771_v30 = vmax.f32 %v715_v14, 0.0  ;;  %v1333_v14 = vld [vmem:[%s1858_s3 + $0x8] sm:$0xff]  }
 0x257   :  { %v710_v35 = vadd.f32 %v709_v41, %v566_v3  ;;  %v769_v9 = vmax.f32 %v707_v18, 0.0  ;;  %v1336_v18 = vld [vmem:[%s1858_s3 + $0x20] sm:$0xff]   ;;  %v1337_v25 = vld [vmem:[%s1858_s3 + $0x28] sm:$0xff]   ;;  %v1339_v41 = vld [vmem:[%s1858_s3 + $0x38] sm:$0xff]  }
 0x258   :  { %v772_v13 = vmax.f32 %v718_v39, 0.0  ;;  %v1338_v39 = vld [vmem:[%s1858_s3 + $0x30] sm:$0xff]  }
 0x259   :  { %v770_v6 = vmax.f32 %v710_v35, 0.0  ;;  %v811_v35 = vpop.permute.xlu1 %810 }
 0x25a   :  { %v786_v17 = vpack.c.bf16 %v772_v13, %v771_v30 }
 0x25b   :  { %v1220_v34 = vpop.f32.mrb[4].mxu0  ;;  %v785_v59 = vpack.c.bf16 %v770_v6, %v769_v9 }
 0x25c   :  { %v731_v29 = vadd.f32 %v1220_v34, %v586_v11  ;;  %v722_v31 = vpop.f32.mrb[5].mxu0 }
 0x25d   :  { %v723_v0 = vadd.f32 %v722_v31, %v578_v8  ;;  %v1221_v28 = vpop.f32.mrb[6].mxu0  ;;  %1230 = vmatprep.subr.bf16.mxu1 %v785_v59  ;;  %v819_v30 = vpop.permute.xlu1 %818 }
 0x25e   :  { %v734_v55 = vadd.f32 %v1221_v28, %v590_v16  ;;  %v725_v33 = vpop.f32.mrb[7].mxu0  ;;  %1231 = vmatpush3.bf16.msra.mxu1 %v785_v59  ;;  %v775_v63 = vmax.f32 %v731_v29, 0.0  ;;  %v1335_v16 = vld [vmem:[%s1858_s3 + $0x18] sm:$0xff]  }
 0x25f   :  { %v726_v38 = vadd.f32 %v725_v33, %v582_v10  ;;  %1232 = vmatprep.subr.bf16.mxu1 %v786_v17  ;;  %v773_v45 = vmax.f32 %v723_v0, 0.0 }
 0x260   :  { %v776_v60 = vmax.f32 %v734_v55, 0.0 }
 0x261   :  { %v774_v46 = vmax.f32 %v726_v38, 0.0  ;;  %v823_v13 = vpop.permute.xlu1 %822 }
 0x262   :  { %v788_v43 = vpack.c.bf16 %v776_v60, %v775_v63  ;;  %1233 = vmatpush3.bf16.msra.mxu1 %v786_v17 }
 0x263   :  { %v787_v26 = vpack.c.bf16 %v774_v46, %v773_v45  ;;  %v1224_v19 = vpop.f32.mrb[8].mxu0 }
 0x264   :  { %v747_v21 = vadd.f32 %v1224_v19, %v602_v37  ;;  %v738_v20 = vpop.f32.mrb[9].mxu0 }
 0x265   :  { %v739_v58 = vadd.f32 %v738_v20, %v594_v44  ;;  %v1225_v23 = vpop.f32.mrb[10].mxu0  ;;  %1234 = vmatprep.subr.bf16.mxu1 %v787_v26  ;;  %v815_v44 = vpop.permute.xlu0 %814 }
 0x266   :  { %v750_v51 = vadd.f32 %v1225_v23, %v606_v56  ;;  %v741_v61 = vpop.f32.mrb[11].mxu0  ;;  %1235 = vmatpush3.bf16.msra.mxu1 %v787_v26  ;;  %v779_v54 = vmax.f32 %v747_v21, 0.0  ;;  %v1040_v9 = vpop.permute.xlu1 %1039 }
 0x267   :  { %v742_v52 = vadd.f32 %v741_v61, %v598_v27  ;;  %1236 = vmatprep.subr.bf16.mxu1 %v788_v43  ;;  %v777_v24 = vmax.f32 %v739_v58, 0.0 }
 0x268   :  { %v780_v50 = vmax.f32 %v750_v51, 0.0 }
 0x269   :  { %v778_v47 = vmax.f32 %v742_v52, 0.0  ;;  %v1036_v6 = vpop.permute.xlu0 %1035 }
 0x26a   :  { %v790_v1 = vpack.c.bf16 %v780_v50, %v779_v54  ;;  %1237 = vmatpush3.bf16.msra.mxu1 %v788_v43  ;;  %v827_v17 = vpop.permute.xlu1 %826 }
 0x26b   :  { %v789_v49 = vpack.c.bf16 %v778_v47, %v777_v24  ;;  %v1228_v40 = vpop.f32.mrb[12].mxu0 }
 0x26c   :  { %v763_v62 = vadd.f32 %v1228_v40, %v618_v36  ;;  %v754_v22 = vpop.f32.mrb[13].mxu0 }
 0x26d   :  { %v755_v53 = vadd.f32 %v754_v22, %v610_v57  ;;  %v1229_v48 = vpop.f32.mrb[14].mxu0  ;;  %1238 = vmatprep.subr.bf16.mxu1 %v789_v49  ;;  %v1044_v27 = vpop.permute.xlu0 %1043 }
 0x26e   :  { %v766_v7 = vadd.f32 %v1229_v48, %v622_v42  ;;  %v757_v2 = vpop.f32.mrb[15].mxu0  ;;  %1239 = vmatpush3.bf16.msra.mxu1 %v789_v49  ;;  %v783_v4 = vmax.f32 %v763_v62, 0.0  ;;  %v831_v34 = vpop.permute.xlu1 %830 }
 0x26f   :  { %v758_v3 = vadd.f32 %v757_v2, %v614_v32  ;;  %1240 = vmatprep.subr.bf16.mxu1 %v790_v1  ;;  %v781_v8 = vmax.f32 %v755_v53, 0.0 }
 0x270   :  { %v784_v5 = vmax.f32 %v766_v7, 0.0 }
 0x271   :  { %v782_v10 = vmax.f32 %v758_v3, 0.0  ;;  %v1048_v59 = vpop.permute.xlu0 %1047 }
 0x272   :  { %v792_v11 = vpack.c.bf16 %v784_v5, %v783_v4  ;;  %1241 = vmatpush3.bf16.msra.mxu1 %v790_v1  ;;  %v835_v29 = vpop.permute.xlu1 %834 }
 0x273   :  { %v791_v12 = vpack.c.bf16 %v782_v10, %v781_v8 }
 0x275   :  { %1242 = vmatprep.subr.bf16.mxu1 %v791_v12  ;;  %v1052_v31 = vpop.permute.xlu0 %1051 }
 0x276   :  { %1243 = vmatpush3.bf16.msra.mxu1 %v791_v12  ;;  %v839_v0 = vpop.permute.xlu1 %838 }
 0x277   :  { %1244 = vmatprep.subr.bf16.mxu1 %v792_v11 }
 0x279   :  { %v1056_v28 = vpop.permute.xlu0 %1055 }
 0x27a   :  { %1245 = vmatpush3.bf16.msra.mxu1 %v792_v11  ;;  %v843_v55 = vpop.permute.xlu1 %842 }
 0x27d   :  { %1247 = vmatmul.mubr.bf16.vlgmr.msra.gmra.mrb[0].mxu1 %v1333_v14  ;;  %v1060_v33 = vpop.permute.xlu0 %1059 }
 0x27e   :  { %1250 = vmatprep.mubr.bf16.mxu1 %v1334_v15  ;;  %v847_v37 = vpop.permute.xlu1 %846 }
 0x281   :  { %v1064_v38 = vpop.permute.xlu0 %1063 }
 0x282   :  { %v851_v63 = vpop.permute.xlu1 %850 }
 0x285   :  { %1251 = vmatmul.mubr.bf16.gmra.mrb[4].mxu1 %v1335_v16  ;;  %v1068_v60 = vpop.permute.xlu0 %1067 }
 0x286   :  { %1254 = vmatprep.mubr.bf16.mxu1 %v1336_v18  ;;  %v855_v19 = vpop.permute.xlu1 %854 }
 0x289   :  { %v1072_v23 = vpop.permute.xlu0 %1071 }
 0x28a   :  { %v859_v24 = vpop.permute.xlu1 %858 }
 0x28d   :  { %1255 = vmatmul.mubr.bf16.gmra.mrb[8].mxu1 %v1337_v25  ;;  %v1076_v22 = vpop.permute.xlu0 %1075 }
 0x28e   :  { %1258 = vmatprep.mubr.bf16.mxu1 %v1338_v39  ;;  %v863_v11 = vpop.permute.xlu1 %862 }
 0x291   :  { %v1080_v18 = vpop.permute.xlu0 %1079 }
 0x295   :  { %1259 = vmatmul.mubr.bf16.gmra.mrb[12].mxu1 %v1339_v41 }
 0x350   :  { %v1248_v56 = vpop.f32.mrb[0].mxu1 }
 0x351   :  { %v955_v45 = vpop.f32.mrb[1].mxu1  ;;  %v964_v46 = vadd.f32 %v1248_v56, %v819_v30 }
 0x352   :  { %v956_v43 = vadd.f32 %v955_v45, %v811_v35  ;;  %v1249_v26 = vpop.f32.mrb[2].mxu1 }
 0x353   :  { %v967_v21 = vadd.f32 %v1249_v26, %v823_v13  ;;  %v958_v20 = vpop.f32.mrb[3].mxu1  ;;  %v1020_v51 = vmax.f32 %v964_v46, 0.0 }
 0x354   :  { %v1018_v57 = vmax.f32 %v956_v43, 0.0  ;;  %v959_v58 = vadd.f32 %v958_v20, %v815_v44 }
 0x355   :  { %v1021_v32 = vmax.f32 %v967_v21, 0.0  ;;  %v1100_v1 = vmul.f32 %v1044_v27, %v1020_v51 }
 0x356   :  { %v1019_v61 = vmax.f32 %v959_v58, 0.0  ;;  %v1098_v52 = vmul.f32 %v1036_v6, %v1018_v57 }
 0x357   :  { %v1101_v42 = vmul.f32 %v1048_v59, %v1021_v32  ;;  %v867_v59 = vpop.permute.xlu1 %866 }
 0x358   :  { %v1099_v54 = vmul.f32 %v1040_v9, %v1019_v61  ;;  %v1252_v50 = vpop.f32.mrb[4].mxu1 }
 0x359   :  { %v971_v47 = vpop.f32.mrb[5].mxu1  ;;  %v980_v49 = vadd.f32 %v1252_v50, %v835_v29 }
 0x35a   :  { %v1114_v36 = vadd.f32 %v1099_v54, %v1098_v52  ;;  %v972_v40 = vadd.f32 %v971_v47, %v827_v17  ;;  %v1253_v62 = vpop.f32.mrb[6].mxu1 }
 0x35b   :  { %v974_v53 = vpop.f32.mrb[7].mxu1  ;;  %v983_v2 = vadd.f32 %v1253_v62, %v839_v0  ;;  %v1024_v4 = vmax.f32 %v980_v49, 0.0 }
 0x35c   :  { %v1115_v48 = vadd.f32 %v1114_v36, %v1100_v1  ;;  %v1022_v7 = vmax.f32 %v972_v40, 0.0  ;;  %v975_v3 = vadd.f32 %v974_v53, %v831_v34 }
 0x35d   :  { %v1025_v14 = vmax.f32 %v983_v2, 0.0  ;;  %v1104_v39 = vmul.f32 %v1060_v33, %v1024_v4 }
 0x35e   :  { %v1102_v5 = vmul.f32 %v1052_v31, %v1022_v7  ;;  %v1116_v8 = vadd.f32 %v1115_v48, %v1101_v42  ;;  %v1023_v10 = vmax.f32 %v975_v3, 0.0 }
 0x35f   :  { %v1105_v6 = vmul.f32 %v1064_v38, %v1025_v14  ;;  %v871_v38 = vpop.permute.xlu1 %870 }
 0x360   :  { %v1117_v12 = vadd.f32 %v1116_v8, %v1102_v5  ;;  %v1103_v15 = vmul.f32 %v1056_v28, %v1023_v10  ;;  %v1256_v16 = vpop.f32.mrb[8].mxu1  ;;  %v1084_v28 = vpop.permute.xlu0 %1083  ;;  %v1136_v5 = vstv %s1859_s4 }
 0x361   :  { %v987_v25 = vpop.f32.mrb[9].mxu1  ;;  %v996_v35 = vadd.f32 %v1256_v16, %v851_v63 }
 0x362   :  { %v1118_v41 = vadd.f32 %v1117_v12, %v1103_v15  ;;  %v988_v30 = vadd.f32 %v987_v25, %v843_v55  ;;  %v1257_v13 = vpop.f32.mrb[10].mxu1 }
 0x363   :  { %v999_v44 = vadd.f32 %v1257_v13, %v855_v19  ;;  %v990_v9 = vpop.f32.mrb[11].mxu1  ;;  %v1028_v29 = vmax.f32 %v996_v35, 0.0 }
 0x364   :  { %v1119_v17 = vadd.f32 %v1118_v41, %v1104_v39  ;;  %v1026_v27 = vmax.f32 %v988_v30, 0.0  ;;  %v991_v34 = vadd.f32 %v990_v9, %v847_v37  ;;  %v1088_v32 = vpop.permute.xlu0 %1087 }
 0x365   :  { %v1029_v45 = vmax.f32 %v999_v44, 0.0  ;;  %v1108_v63 = vmul.f32 %v1076_v22, %v1028_v29 }
 0x366   :  { %v1106_v31 = vmul.f32 %v1068_v60, %v1026_v27  ;;  %v1120_v0 = vadd.f32 %v1119_v17, %v1105_v6  ;;  %v1027_v56 = vmax.f32 %v991_v34, 0.0 }
 0x367   :  { %v1109_v57 = vmul.f32 %v1080_v18, %v1029_v45 }
 0x368   :  { %v1121_v46 = vadd.f32 %v1120_v0, %v1106_v31  ;;  %v1107_v43 = vmul.f32 %v1072_v23, %v1027_v56  ;;  %v1260_v33 = vpop.f32.mrb[12].mxu1  ;;  %v1092_v23 = vpop.permute.xlu1 %1091 }
 0x369   :  { %v1003_v26 = vpop.f32.mrb[13].mxu1  ;;  %v1012_v21 = vadd.f32 %v1260_v33, %v867_v59 }
 0x36a   :  { %v1122_v55 = vadd.f32 %v1121_v46, %v1107_v43  ;;  %v1004_v19 = vadd.f32 %v1003_v26, %v859_v24  ;;  %v1261_v20 = vpop.f32.mrb[14].mxu1  ;;  %v1096_v24 = vpop.permute.xlu0 %1095 }
 0x36b   :  { %v1006_v58 = vpop.f32.mrb[15].mxu1  ;;  %v1015_v61 = vadd.f32 %v1261_v20, %v871_v38  ;;  %v1032_v52 = vmax.f32 %v1012_v21, 0.0 }
 0x36c   :  { %v1123_v37 = vadd.f32 %v1122_v55, %v1108_v63  ;;  %v1030_v51 = vmax.f32 %v1004_v19, 0.0  ;;  %v1007_v60 = vadd.f32 %v1006_v58, %v863_v11 }
 0x36d   :  { %v1033_v36 = vmax.f32 %v1015_v61, 0.0  ;;  %v1112_v40 = vmul.f32 %v1092_v23, %v1032_v52 }
 0x36e   :  { %v1110_v54 = vmul.f32 %v1084_v28, %v1030_v51  ;;  %v1124_v50 = vadd.f32 %v1123_v37, %v1109_v57  ;;  %v1031_v47 = vmax.f32 %v1007_v60, 0.0 }
 0x36f   :  { %v1113_v22 = vmul.f32 %v1096_v24, %v1033_v36 }
 0x370   :  { %v1125_v1 = vadd.f32 %v1124_v50, %v1110_v54  ;;  %v1111_v49 = vmul.f32 %v1088_v32, %v1031_v47 }
 0x372   :  { %v1126_v62 = vadd.f32 %v1125_v1, %v1111_v49 }
 0x374   :  { %v1127_v42 = vadd.f32 %v1126_v62, %v1112_v40 }
 0x376   :  { %v1128_v53 = vadd.f32 %v1127_v42, %v1113_v22 }
 0x378   :  { %v1129_v48 = vrot.slane %v1128_v53, 4 }
 0x37a   :  { %v1130_v7 = vadd.f32 %v1129_v48, %v1128_v53 }
 0x37c   :  { %v1131_v2 = vrot.slane %v1130_v7, 2 }
 0x37e   :  { %v1132_v3 = vadd.f32 %v1131_v2, %v1130_v7 }
 0x380   :  { %v1133_v4 = vrot.slane %v1132_v3, 1 }
 0x382   :  { %v1134_v8 = vadd.f32 %v1133_v4, %v1132_v3 }
 0x384   :  { %v1137_v10 = vadd.f32 %v1136_v5, %v1134_v8 }
 0x386   :  { %v1165_v11 = vmul.f32 -1.442695, %v1137_v10 }
 0x388   :  { %1340 = vpow2.f32 %v1165_v11 }
 0x392   :  { %v1341_v12 = vpop.eup %1340 }
 0x393   :  { %v1141_v14 = vadd.f32 1.0, %v1341_v12 }
 0x395   :  { %1342 = vrcp.f32 %v1141_v14 }
 0x39f   :  { %v1343_v15 = vpop.eup %1342 }
 0x3a0   :  { %1144 = vst [vmem:[%s1860_s5] sm:$0x1] %v1343_v15 }

</bundles_post_ra>
